<compile_context>
chip_gen: v6e
topology: v6e:2x2x1
jax: 0.10.0
libtpu: 0.0.40
codegen_flags: <defaults>
</compile_context>

<pallas_src>
import functools
import math

import jax
import jax.numpy as jnp
from jax.experimental import pallas as pl
from jax.experimental.pallas import tpu as pltpu

LANE = 128                     # TPU lane width (last-dim tile)
_VMEM_FALLBACK = 64 * 2**20    # v7x per-TensorCore VMEM (most restrictive)


def _round_up(v, m):
    return -(-v // m) * m


def _physical_vmem_bytes():
    try:
        info = pltpu.get_tpu_info()
        v = getattr(info, "vmem_capacity_bytes", None)
        if v:
            return int(v)
    except Exception:
        pass
    return _VMEM_FALLBACK


def _pad_to(a, shape):
    pads = [(0, t - s) for t, s in zip(shape, a.shape)]
    if all(p == (0, 0) for p in pads):
        return a
    return jnp.pad(a, pads)


# ----------------------------------------------------------------------------
# Kernel: one (tm, H) token tile through one F-chunk of one expert's GEGLU.
# Expert selection is done entirely by the BlockSpec index_maps via the
# prefetched tile->expert table; the F contraction accumulates in f32 scratch.
# ----------------------------------------------------------------------------
def _geglu_expert_kernel(gelu_approximate,
                         tile_expert_ref, nused_ref,
                         x_ref, w1_ref, b1_ref, w2_ref, b2_ref, wo_ref, bo_ref,
                         out_ref, acc_ref):
    del tile_expert_ref                      # consumed only by the index_maps
    i = pl.program_id(0)                     # token tile
    f = pl.program_id(1)                     # F chunk

    @pl.when(i < nused_ref[0])               # skip padding tail tiles entirely
    def _():
        @pl.when(f == 0)
        def _():
            acc_ref[...] = jnp.zeros_like(acc_ref)

        x = x_ref[...]                                               # (tm, H)
        x1 = jnp.dot(x, w1_ref[...], preferred_element_type=jnp.float32) + b1_ref[...]
        x2 = jnp.dot(x, w2_ref[...], preferred_element_type=jnp.float32) + b2_ref[...]
        # tanh GELU lowers to the EUP slot; erf GELU (exact PyTorch) is a long
        # VALU polynomial and is kept only behind gelu_approximate=False.
        g = x1 * jax.nn.gelu(x2, approximate=gelu_approximate)       # (tm, Fc) f32
        acc_ref[...] += jnp.dot(g.astype(wo_ref.dtype), wo_ref[...],
                                preferred_element_type=jnp.float32)

        @pl.when(f == pl.num_programs(1) - 1)
        def _():
            out_ref[...] = (acc_ref[...] + bo_ref[...]).astype(out_ref.dtype)


# ----------------------------------------------------------------------------
# One-time parameter preparation (call OUTSIDE the per-step function):
# split fused fc -> W1/W2, pad H/F up to lane (128) multiples, cast to the MXU
# compute dtype.  Biases stay f32.
# ----------------------------------------------------------------------------
def prepare_moe_params(params, compute_dtype=jnp.bfloat16):
    cd = jnp.dtype(compute_dtype)
    wg, bg, wfc, bfc, wout, bout = (params[k] for k in
                                    ("wg", "bg", "wfc", "bfc", "wout", "bout"))
    E, H, F2 = wfc.shape
    F = F2 // 2
    Hp = _round_up(H, LANE)
    Fp = _round_up(F, LANE)
    return dict(
        wg=wg.astype(jnp.float32), bg=bg.astype(jnp.float32),
        w1=_pad_to(wfc[:, :, :F], (E, Hp, Fp)).astype(cd),          # (E, Hp, Fp)
        w2=_pad_to(wfc[:, :, F:], (E, Hp, Fp)).astype(cd),          # (E, Hp, Fp)
        b1=_pad_to(bfc[:, :F], (E, Fp)).astype(jnp.float32)[:, None, :],
        b2=_pad_to(bfc[:, F:], (E, Fp)).astype(jnp.float32)[:, None, :],
        wo=_pad_to(wout, (E, Fp, Hp)).astype(cd),                   # (E, Fp, Hp)
        bo=_pad_to(bout, (E, Hp)).astype(jnp.float32)[:, None, :],  # (E, 1, Hp)
    )


def moe_feed_forward(x, prepared, *, gelu_approximate=True):
    """x: (B, S, H).  prepared: output of prepare_moe_params().
    Returns (output (B, S, H), utilization_loss scalar)."""
    wg, bg = prepared["wg"], prepared["bg"]
    w1, b1, w2, b2, wo, bo = (prepared[k] for k in ("w1", "b1", "w2", "b2", "wo", "bo"))
    B, S, H = x.shape
    T = B * S
    E, Hp, Fp = w1.shape
    cd = w1.dtype
    isz = cd.itemsize
    out_isz = jnp.dtype(x.dtype).itemsize

    xf = x.reshape(T, H)

    # ---- Router (hoisted out of the kernel): one small f32 matmul + argmax. -
    logits = jnp.dot(xf.astype(jnp.float32), wg) + bg
    eid = jnp.argmax(logits, axis=-1).astype(jnp.int32)              # (T,)
    # top_k=1 -> softmax over a single logit == 1.0; no per-token scaling.
    counts = jnp.bincount(eid, length=E)                             # (E,)

    # ---- Tile sizes & VMEM budget (portable across v5e/v6e/v7x). -------------
    phys_vmem = _physical_vmem_bytes()
    budget = (phys_vmem * 7) // 10           # headroom for compiler scratch

    sublane = 8 * max(1, 4 // isz)           # 8 (f32) / 16 (bf16) / 32 (int8, fp8)
    if T >= 1024:
        tm = 512
    elif T >= 256:
        tm = 256
    else:
        tm = _round_up(T, sublane)

    def working_set(tm_, fc):
        # Exact double-buffer accounting: 2x per pipelined input/output block.
        wts = 2 * (2 * Hp * fc + fc * Hp) * isz          # W1, W2, Wout blocks
        bias = 2 * (2 * fc + Hp) * 4                     # b1, b2, bout blocks
        xio = 2 * tm_ * Hp * (isz + out_isz)             # x block + out block
        acc = tm_ * Hp * 4                               # f32 accumulator scratch
        live = 6 * tm_ * fc * 4                          # x1/x2/g/cast temps (est.)
        return wts + bias + xio + acc + live

    while tm > sublane and working_set(tm, LANE) > budget:
        tm = max(sublane, _round_up(tm // 2, sublane))

    # Largest lane-aligned F chunk dividing Fp that fits the budget
    # (Fc == Fp -> single chunk, no repeated weight traffic per token tile).
    f_candidates = [Fp // k for k in range(1, Fp // LANE + 1)
                    if Fp % k == 0 and (Fp // k) % LANE == 0]
    Fc = f_candidates[-1]
    for c in f_candidates:
        if working_set(tm, c) <= budget:
            Fc = c
            break
    Fn = Fp // Fc

    # ---- Group tokens by expert; pad each group to a multiple of tm. --------
    num_tiles = pl.cdiv(T, tm) + E           # static upper bound on padded tiles
    P = num_tiles * tm

    order = jnp.argsort(eid).astype(jnp.int32)                       # sorted->orig
    sorted_eid = eid[order]
    tiles_per_expert = (counts + tm - 1) // tm                       # (E,)
    tile_end = jnp.cumsum(tiles_per_expert)                          # (E,)
    tile_start = tile_end - tiles_per_expert
    group_start = jnp.cumsum(counts) - counts
    rank_in_group = jnp.arange(T, dtype=jnp.int32) - group_start[sorted_eid]
    padded_pos = (tm * tile_start[sorted_eid] + rank_in_group).astype(jnp.int32)

    num_used = tile_end[-1:].astype(jnp.int32)                       # (1,)
    # tile -> expert id.  Tail (unused) tiles reuse the last used expert so no
    # spurious weight DMA is issued (their compute is pl.when-skipped).
    tile_ids = jnp.arange(num_tiles, dtype=jnp.int32)
    raw_te = jnp.sum(tile_ids[:, None] >= tile_end[None, :], axis=1).astype(jnp.int32)
    last_expert = jnp.max(jnp.where(counts > 0, jnp.arange(E, dtype=jnp.int32), 0))
    tile_expert = jnp.where(raw_te >= E, last_expert, raw_te).astype(jnp.int32)

    # padded slot -> original token (padding slots point at token 0).
    gather_idx = jnp.zeros((P,), jnp.int32).at[padded_pos].set(order)
    token_padded_pos = jnp.zeros((T,), jnp.int32).at[order].set(padded_pos)

    # TODO(synk): for very small (memory-bound) experts this gather and the
    # final un-permute could be fused into the kernel with manual DMAs.
    x_padded = _pad_to(xf[gather_idx], (P, Hp)).astype(cd)           # (P, Hp)

    # ---- VMEM limit & cost estimate. -----------------------------------------
    need = working_set(tm, Fc) + 4 * 2**20
    vmem_limit = int(min(max(need, 32 * 2**20), (phys_vmem * 17) // 20))

    w_bytes = 3 * Hp * Fp * isz + (2 * Fp + Hp) * 4                  # one expert
    weight_fetches = min(num_tiles, E) if Fn == 1 else num_tiles
    cost = pl.CostEstimate(
        flops=6 * P * Hp * Fp,
        transcendentals=P * Fp,
        bytes_accessed=P * Hp * (isz + out_isz) + weight_fetches * w_bytes,
    )

    grid_spec = pltpu.PrefetchScalarGridSpec(
        num_scalar_prefetch=2,                       # tile_expert, num_used
        grid=(num_tiles, Fn),                        # (token tiles, F chunks)
        in_specs=[
            # NOTE: default double buffering kept for v7x VMEM portability; on
            # 128 MiB v5e/v6e, pipeline_mode=pl.Buffered(3) on the weight specs
            # can hide expert-switch DMAs (sweep if profiling shows exposure).
            pl.BlockSpec((tm, Hp), lambda i, f, te, nu: (i, 0)),                       # x
            pl.BlockSpec((pl.Squeezed(), Hp, Fc), lambda i, f, te, nu: (te[i], 0, f)),  # W1
            pl.BlockSpec((pl.Squeezed(), 1, Fc), lambda i, f, te, nu: (te[i], 0, f)),   # b1
            pl.BlockSpec((pl.Squeezed(), Hp, Fc), lambda i, f, te, nu: (te[i], 0, f)),  # W2
            pl.BlockSpec((pl.Squeezed(), 1, Fc), lambda i, f, te, nu: (te[i], 0, f)),   # b2
            pl.BlockSpec((pl.Squeezed(), Fc, Hp), lambda i, f, te, nu: (te[i], f, 0)),  # Wout
            pl.BlockSpec((pl.Squeezed(), 1, Hp), lambda i, f, te, nu: (te[i], 0, 0)),   # bout
        ],
        out_specs=pl.BlockSpec((tm, Hp), lambda i, f, te, nu: (i, 0)),
        scratch_shapes=[pltpu.VMEM((tm, Hp), jnp.float32)],
    )

    out_padded = pl.pallas_call(
        functools.partial(_geglu_expert_kernel, gelu_approximate),
        grid_spec=grid_spec,
        out_shape=jax.ShapeDtypeStruct((P, Hp), x.dtype),
        compiler_params=pltpu.CompilerParams(
            # Token tiles shard across TensorCores on v7x; F chunks are a
            # sequential reduction into the scratch accumulator.
            dimension_semantics=("parallel", "arbitrary"),
            vmem_limit_bytes=vmem_limit,
        ),
        cost_estimate=cost,
    )(tile_expert, num_used, x_padded, w1, b1, w2, b2, wo, bo)

    # Un-permute: gather each token's row back from its padded slot.
    out_flat = out_padded[token_padded_pos]
    if Hp != H:
        out_flat = out_flat[:, :H]

    # ---- usage / utilization loss (gate score is exactly 1.0 for top_k=1). --
    usage = (counts > 0).astype(jnp.float32)
    util_loss = jnp.sum((usage - 1.0 / E) ** 2) + 1e-8

    # TODO(synk): nn.Dropout implemented as identity (eval-mode semantics).
    return out_flat.reshape(B, S, H), util_loss


# ----------------------------------------------------------------------------
# Parameter init (PyTorch nn.Linear-style) and pure-JAX reference.
# ----------------------------------------------------------------------------
def init_params(key, hidden_size, expert_dim, num_experts):
    def linear(k, fan_in, fan_out, lead=()):
        k1, k2 = jax.random.split(k)
        bound = 1.0 / math.sqrt(fan_in)
        w = jax.random.uniform(k1, lead + (fan_in, fan_out), jnp.float32,
                               minval=-bound, maxval=bound)
        b = jax.random.uniform(k2, lead + (fan_out,), jnp.float32,
                               minval=-bound, maxval=bound)
        return w, b

    kg, kfc, kout = jax.random.split(key, 3)
    wg, bg = linear(kg, hidden_size, num_experts)                      # (H,E), (E,)
    wfc, bfc = linear(kfc, hidden_size, 2 * expert_dim, lead=(num_experts,))
    wout, bout = linear(kout, expert_dim, hidden_size, lead=(num_experts,))
    return dict(wg=wg, bg=bg, wfc=wfc, bfc=bfc, wout=wout, bout=bout)


def reference(x, params):
    """Pure-JAX reference mirroring the PyTorch forward (top_k=1, eval dropout)."""
    wg, bg, wfc, bfc, wout, bout = (params[k] for k in
                                    ("wg", "bg", "wfc", "bfc", "wout", "bout"))
    B, S, H = x.shape
    E = wg.shape[1]
    F = wout.shape[1]
    xf = x.reshape(-1, H)
    logits = xf @ wg + bg
    eid = jnp.argmax(logits, axis=-1)
    out = jnp.zeros_like(xf)
    usage = jnp.zeros((E,), jnp.float32)
    for e in range(E):
        mask = eid == e
        h = xf @ wfc[e] + bfc[e]
        x1, x2 = h[:, :F], h[:, F:]
        y = (x1 * jax.nn.gelu(x2, approximate=False)) @ wout[e] + bout[e]
        out = jnp.where(mask[:, None], y, out)
        usage = usage.at[e].set(jnp.where(jnp.any(mask), 1.0, 0.0))
    loss = jnp.sum((usage - 1.0 / E) ** 2) + 1e-8
    return out.reshape(B, S, H), loss


if __name__ == "__main__":
    B, S, H = 2, 8, 32
    expert_dim, num_experts = 64, 4

    key = jax.random.PRNGKey(0)
    kx, kp = jax.random.split(key)
    x = jax.random.normal(kx, (B, S, H), jnp.float32)
    params = init_params(kp, H, expert_dim, num_experts)
    ref_out, ref_loss = reference(x, params)

    # Default fast path: bf16 MXU operands + tanh GELU (f32 accumulation).
    # Expected tolerance vs the f32/erf PyTorch reference is ~1e-2 level.
    prep_bf16 = prepare_moe_params(params)                    # bfloat16 weights
    fwd = jax.jit(moe_feed_forward)
    out, loss = jax.block_until_ready(fwd(x, prep_bf16))
    assert out.shape == x.shape and out.dtype == x.dtype
    assert jnp.allclose(out, ref_out, atol=5e-2, rtol=5e-2), "bf16 output mismatch"
    assert jnp.allclose(loss, ref_loss, atol=1e-6), "loss mismatch (bf16 run)"

    # Exact-parity path: f32 operands + erf GELU matches PyTorch semantics.
    prep_f32 = prepare_moe_params(params, compute_dtype=jnp.float32)
    fwd_exact = jax.jit(functools.partial(moe_feed_forward, gelu_approximate=False))
    out_x, loss_x = jax.block_until_ready(fwd_exact(x, prep_f32))
    assert jnp.allclose(out_x, ref_out, atol=1e-4, rtol=1e-4), "f32 output mismatch"
    assert jnp.allclose(loss_x, ref_loss, atol=1e-6), "loss mismatch (f32 run)"

    print("KERNEL_OK")
</pallas_src>

<mosaic_0001>
module attributes {stable_mosaic.version = 11 : i64} {
  func.func private @main(%arg0: i32) attributes {dimension_semantics = [#tpu.dimension_semantics<core_parallel>], iteration_bounds = array<i64: 2>, tpu.core_type = #tpu.core_type<sc_scalar_subcore>, window_params = []} {
    return
  }
}

module attributes {stable_mosaic.version = 11 : i64} {
  func.func private @main(%arg0: i32) attributes {dimension_semantics = [#tpu.dimension_semantics<core_parallel>], iteration_bounds = array<i64: 2>, tpu.core_type = #tpu.core_type<sc_scalar_subcore>, window_params = []} {
    return
  }
}

module attributes {stable_mosaic.version = 11 : i64} {
  func.func @_geglu_expert_kernel(%arg0: i32, %arg1: i32, %arg2: memref<5xi32, #tpu.memory_space<smem>>, %arg3: memref<1xi32, #tpu.memory_space<smem>>, %arg4: memref<16x128xbf16, #tpu.memory_space<vmem>>, %arg5: memref<1x128x128xbf16, #tpu.memory_space<vmem>>, %arg6: memref<1x1x128xf32, #tpu.memory_space<vmem>>, %arg7: memref<1x128x128xbf16, #tpu.memory_space<vmem>>, %arg8: memref<1x1x128xf32, #tpu.memory_space<vmem>>, %arg9: memref<1x128x128xbf16, #tpu.memory_space<vmem>>, %arg10: memref<1x1x128xf32, #tpu.memory_space<vmem>>, %arg11: memref<16x128xf32, #tpu.memory_space<vmem>>, %arg12: memref<16x128xf32, #tpu.memory_space<vmem>>) attributes {dimension_semantics = [#tpu.dimension_semantics<parallel>, #tpu.dimension_semantics<arbitrary>], iteration_bounds = array<i64: 5, 1>, scalar_prefetch = 2 : i64, scratch_operands = 1 : i64, tpu.core_type = #tpu.core_type<tc>, window_params = [{transform_indices = @transform_0, window_bounds = array<i64: 16, 128>}, {transform_indices = @transform_1, window_bounds = array<i64: 1, 128, 128>}, {transform_indices = @transform_2, window_bounds = array<i64: 1, 1, 128>}, {transform_indices = @transform_3, window_bounds = array<i64: 1, 128, 128>}, {transform_indices = @transform_4, window_bounds = array<i64: 1, 1, 128>}, {transform_indices = @transform_5, window_bounds = array<i64: 1, 128, 128>}, {transform_indices = @transform_6, window_bounds = array<i64: 1, 1, 128>}, {transform_indices = @transform_7, window_bounds = array<i64: 16, 128>}]} {
    %c0 = arith.constant 0 : index
    %0 = memref.load %arg3[%c0] : memref<1xi32, #tpu.memory_space<smem>>
    %1 = arith.cmpi slt, %arg0, %0 : i32
    %2 = arith.extui %1 : i1 to i32
    %c0_i32 = arith.constant 0 : i32
    %3 = arith.cmpi ne, %2, %c0_i32 : i32
    scf.if %3 {
      %c0_i32_0 = arith.constant 0 : i32
      %4 = arith.cmpi eq, %arg1, %c0_i32_0 : i32
      %5 = arith.extui %4 : i1 to i32
      %c0_i32_1 = arith.constant 0 : i32
      %6 = arith.cmpi ne, %5, %c0_i32_1 : i32
      scf.if %6 {
        %cst_31 = arith.constant 0.000000e+00 : f32
        %46 = vector.broadcast %cst_31 : f32 to vector<16x128xf32>
        %c0_32 = arith.constant 0 : index
        %c0_33 = arith.constant 0 : index
        %47 = vector.load %arg12[%c0_32, %c0_33] : memref<16x128xf32, #tpu.memory_space<vmem>>, vector<16x128xf32>
        tpu.vector_store %arg12[%c0_32, %c0_33], %46 {strides = array<i32>} : memref<16x128xf32, #tpu.memory_space<vmem>>, vector<16x128xf32>,
      } else {
      }
      %c0_2 = arith.constant 0 : index
      %c0_3 = arith.constant 0 : index
      %7 = vector.load %arg4[%c0_2, %c0_3] : memref<16x128xbf16, #tpu.memory_space<vmem>>, vector<16x128xbf16>
      %c0_4 = arith.constant 0 : index
      %c0_5 = arith.constant 0 : index
      %c0_6 = arith.constant 0 : index
      %8 = vector.load %arg5[%c0_4, %c0_5, %c0_6] : memref<1x128x128xbf16, #tpu.memory_space<vmem>>, vector<1x128x128xbf16>
      %9 = vector.shape_cast %8 : vector<1x128x128xbf16> to vector<128x128xbf16>
      %cst = arith.constant dense<0.000000e+00> : vector<16x128xf32>
      %10 = tpu.matmul %7, %9, %cst {dimension_numbers = #tpu.dot_dimension_numbers<[1], [0], [0], [1], [0, 0, 1, 1], [], []>} : vector<16x128xbf16>, vector<128x128xbf16>, vector<16x128xf32> -> vector<16x128xf32>
      %c0_7 = arith.constant 0 : index
      %c0_8 = arith.constant 0 : index
      %c0_9 = arith.constant 0 : index
      %11 = vector.load %arg6[%c0_7, %c0_8, %c0_9] : memref<1x1x128xf32, #tpu.memory_space<vmem>>, vector<1x1x128xf32>
      %12 = vector.shape_cast %11 : vector<1x1x128xf32> to vector<1x128xf32>
      %13 = vector.broadcast %12 : vector<1x128xf32> to vector<16x128xf32>
      %14 = arith.addf %10, %13 : vector<16x128xf32>
      %c0_10 = arith.constant 0 : index
      %c0_11 = arith.constant 0 : index
      %c0_12 = arith.constant 0 : index
      %15 = vector.load %arg7[%c0_10, %c0_11, %c0_12] : memref<1x128x128xbf16, #tpu.memory_space<vmem>>, vector<1x128x128xbf16>
      %16 = vector.shape_cast %15 : vector<1x128x128xbf16> to vector<128x128xbf16>
      %cst_13 = arith.constant dense<0.000000e+00> : vector<16x128xf32>
      %17 = tpu.matmul %7, %16, %cst_13 {dimension_numbers = #tpu.dot_dimension_numbers<[1], [0], [0], [1], [0, 0, 1, 1], [], []>} : vector<16x128xbf16>, vector<128x128xbf16>, vector<16x128xf32> -> vector<16x128xf32>
      %c0_14 = arith.constant 0 : index
      %c0_15 = arith.constant 0 : index
      %c0_16 = arith.constant 0 : index
      %18 = vector.load %arg8[%c0_14, %c0_15, %c0_16] : memref<1x1x128xf32, #tpu.memory_space<vmem>>, vector<1x1x128xf32>
      %19 = vector.shape_cast %18 : vector<1x1x128xf32> to vector<1x128xf32>
      %20 = vector.broadcast %19 : vector<1x128xf32> to vector<16x128xf32>
      %21 = arith.addf %17, %20 : vector<16x128xf32>
      %22 = arith.mulf %21, %21 : vector<16x128xf32>
      %23 = arith.mulf %21, %22 : vector<16x128xf32>
      %cst_17 = arith.constant 4.471500e-02 : f32
      %24 = vector.broadcast %cst_17 : f32 to vector<16x128xf32>
      %25 = arith.mulf %24, %23 : vector<16x128xf32>
      %26 = arith.addf %21, %25 : vector<16x128xf32>
      %cst_18 = arith.constant 0.797884583 : f32
      %27 = vector.broadcast %cst_18 : f32 to vector<16x128xf32>
      %28 = arith.mulf %27, %26 : vector<16x128xf32>
      %29 = math.tanh %28 : vector<16x128xf32>
      %cst_19 = arith.constant 1.000000e+00 : f32
      %30 = vector.broadcast %cst_19 : f32 to vector<16x128xf32>
      %31 = arith.addf %30, %29 : vector<16x128xf32>
      %cst_20 = arith.constant 5.000000e-01 : f32
      %32 = vector.broadcast %cst_20 : f32 to vector<16x128xf32>
      %33 = arith.mulf %32, %31 : vector<16x128xf32>
      %34 = arith.mulf %21, %33 : vector<16x128xf32>
      %35 = arith.mulf %14, %34 : vector<16x128xf32>
      %c0_21 = arith.constant 0 : index
      %c0_22 = arith.constant 0 : index
      %36 = vector.load %arg12[%c0_21, %c0_22] : memref<16x128xf32, #tpu.memory_space<vmem>>, vector<16x128xf32>
      %37 = arith.truncf %35 : vector<16x128xf32> to vector<16x128xbf16>
      %c0_23 = arith.constant 0 : index
      %c0_24 = arith.constant 0 : index
      %c0_25 = arith.constant 0 : index
      %38 = vector.load %arg9[%c0_23, %c0_24, %c0_25] : memref<1x128x128xbf16, #tpu.memory_space<vmem>>, vector<1x128x128xbf16>
      %39 = vector.shape_cast %38 : vector<1x128x128xbf16> to vector<128x128xbf16>
      %cst_26 = arith.constant dense<0.000000e+00> : vector<16x128xf32>
      %40 = tpu.matmul %37, %39, %cst_26 {dimension_numbers = #tpu.dot_dimension_numbers<[1], [0], [0], [1], [0, 0, 1, 1], [], []>} : vector<16x128xbf16>, vector<128x128xbf16>, vector<16x128xf32> -> vector<16x128xf32>
      %41 = arith.addf %36, %40 : vector<16x128xf32>
      %c0_27 = arith.constant 0 : index
      %c0_28 = arith.constant 0 : index
      %42 = vector.load %arg12[%c0_27, %c0_28] : memref<16x128xf32, #tpu.memory_space<vmem>>, vector<16x128xf32>
      tpu.vector_store %arg12[%c0_27, %c0_28], %41 {strides = array<i32>} : memref<16x128xf32, #tpu.memory_space<vmem>>, vector<16x128xf32>,
      %c0_i32_29 = arith.constant 0 : i32
      %43 = arith.cmpi eq, %arg1, %c0_i32_29 : i32
      %44 = arith.extui %43 : i1 to i32
      %c0_i32_30 = arith.constant 0 : i32
      %45 = arith.cmpi ne, %44, %c0_i32_30 : i32
      scf.if %45 {
        %c0_31 = arith.constant 0 : index
        %c0_32 = arith.constant 0 : index
        %46 = vector.load %arg12[%c0_31, %c0_32] : memref<16x128xf32, #tpu.memory_space<vmem>>, vector<16x128xf32>
        %c0_33 = arith.constant 0 : index
        %c0_34 = arith.constant 0 : index
        %c0_35 = arith.constant 0 : index
        %47 = vector.load %arg10[%c0_33, %c0_34, %c0_35] : memref<1x1x128xf32, #tpu.memory_space<vmem>>, vector<1x1x128xf32>
        %48 = vector.shape_cast %47 : vector<1x1x128xf32> to vector<1x128xf32>
        %49 = vector.broadcast %48 : vector<1x128xf32> to vector<16x128xf32>
        %50 = arith.addf %46, %49 : vector<16x128xf32>
        %c0_36 = arith.constant 0 : index
        %c0_37 = arith.constant 0 : index
        %51 = vector.load %arg11[%c0_36, %c0_37] : memref<16x128xf32, #tpu.memory_space<vmem>>, vector<16x128xf32>
        tpu.vector_store %arg11[%c0_36, %c0_37], %50 {strides = array<i32>} : memref<16x128xf32, #tpu.memory_space<vmem>>, vector<16x128xf32>,
      } else {
      }
    } else {
    }
    return
  }
  func.func @transform_0(%arg0: i32, %arg1: i32, %arg2: memref<5xi32, #tpu.memory_space<smem>>, %arg3: memref<1xi32, #tpu.memory_space<smem>>) -> (i32, i32) {
    %c0_i32 = arith.constant 0 : i32
    %c0_i32_0 = arith.constant 0 : i32
    return %arg0, %c0_i32 : i32, i32
  }
  func.func @transform_1(%arg0: i32, %arg1: i32, %arg2: memref<5xi32, #tpu.memory_space<smem>>, %arg3: memref<1xi32, #tpu.memory_space<smem>>) -> (i32, i32, i32) {
    %0 = arith.index_cast %arg0 : i32 to index
    %1 = memref.load %arg2[%0] : memref<5xi32, #tpu.memory_space<smem>>
    %c0_i32 = arith.constant 0 : i32
    %c0_i32_0 = arith.constant 0 : i32
    return %1, %c0_i32, %arg1 : i32, i32, i32
  }
  func.func @transform_2(%arg0: i32, %arg1: i32, %arg2: memref<5xi32, #tpu.memory_space<smem>>, %arg3: memref<1xi32, #tpu.memory_space<smem>>) -> (i32, i32, i32) {
    %0 = arith.index_cast %arg0 : i32 to index
    %1 = memref.load %arg2[%0] : memref<5xi32, #tpu.memory_space<smem>>
    %c0_i32 = arith.constant 0 : i32
    %c0_i32_0 = arith.constant 0 : i32
    return %1, %c0_i32, %arg1 : i32, i32, i32
  }
  func.func @transform_3(%arg0: i32, %arg1: i32, %arg2: memref<5xi32, #tpu.memory_space<smem>>, %arg3: memref<1xi32, #tpu.memory_space<smem>>) -> (i32, i32, i32) {
    %0 = arith.index_cast %arg0 : i32 to index
    %1 = memref.load %arg2[%0] : memref<5xi32, #tpu.memory_space<smem>>
    %c0_i32 = arith.constant 0 : i32
    %c0_i32_0 = arith.constant 0 : i32
    return %1, %c0_i32, %arg1 : i32, i32, i32
  }
  func.func @transform_4(%arg0: i32, %arg1: i32, %arg2: memref<5xi32, #tpu.memory_space<smem>>, %arg3: memref<1xi32, #tpu.memory_space<smem>>) -> (i32, i32, i32) {
    %0 = arith.index_cast %arg0 : i32 to index
    %1 = memref.load %arg2[%0] : memref<5xi32, #tpu.memory_space<smem>>
    %c0_i32 = arith.constant 0 : i32
    %c0_i32_0 = arith.constant 0 : i32
    return %1, %c0_i32, %arg1 : i32, i32, i32
  }
  func.func @transform_5(%arg0: i32, %arg1: i32, %arg2: memref<5xi32, #tpu.memory_space<smem>>, %arg3: memref<1xi32, #tpu.memory_space<smem>>) -> (i32, i32, i32) {
    %0 = arith.index_cast %arg0 : i32 to index
    %1 = memref.load %arg2[%0] : memref<5xi32, #tpu.memory_space<smem>>
    %c0_i32 = arith.constant 0 : i32
    %c0_i32_0 = arith.constant 0 : i32
    return %1, %arg1, %c0_i32 : i32, i32, i32
  }
  func.func @transform_6(%arg0: i32, %arg1: i32, %arg2: memref<5xi32, #tpu.memory_space<smem>>, %arg3: memref<1xi32, #tpu.memory_space<smem>>) -> (i32, i32, i32) {
    %0 = arith.index_cast %arg0 : i32 to index
    %1 = memref.load %arg2[%0] : memref<5xi32, #tpu.memory_space<smem>>
    %c0_i32 = arith.constant 0 : i32
    %c0_i32_0 = arith.constant 0 : i32
    %c0_i32_1 = arith.constant 0 : i32
    return %1, %c0_i32, %c0_i32_0 : i32, i32, i32
  }
  func.func @transform_7(%arg0: i32, %arg1: i32, %arg2: memref<5xi32, #tpu.memory_space<smem>>, %arg3: memref<1xi32, #tpu.memory_space<smem>>) -> (i32, i32) {
    %c0_i32 = arith.constant 0 : i32
    %c0_i32_0 = arith.constant 0 : i32
    return %arg0, %c0_i32 : i32, i32
  }
}

</mosaic_0001>

<bundles_post_ra>
// kernel: moe_feed_forward.1
= control target key start
LH: loop header
LB: loop body
LE: loop exit
PB: predicated region body
PF: predicated region fallthrough
CT: control target
= control target key end

     0   :  { %s1492_s0 = inlined_call_operand.vmem [shape: s32[5], index: 0, kind: input, shape index: {}]   ;;  %s1493_s1 = inlined_call_operand.<no memory space> [shape: s32[1], index: 1, kind: input, shape index: {}]   ;;  %s1494_s2 = inlined_call_operand.vmem [shape: bf16[80,128], index: 2, kind: input, shape index: {}]   ;;  %s1495_s3 = inlined_call_operand.vmem [shape: bf16[4,128,128], index: 3, kind: input, shape index: {}]   ;;  %s1496_s4 = inlined_call_operand.vmem [shape: f32[4,1,128], index: 4, kind: input, shape index: {}]   ;;  %s1497_s5 = inlined_call_operand.vmem [shape: bf16[4,128,128], index: 5, kind: input, shape index: {}]   ;;  %s1498_s6 = inlined_call_operand.vmem [shape: f32[4,1,128], index: 6, kind: input, shape index: {}]   ;;  %s1499_s7 = inlined_call_operand.vmem [shape: bf16[4,128,128], index: 7, kind: input, shape index: {}]   ;;  %s1500_s8 = inlined_call_operand.vmem [shape: f32[4,1,128], index: 8, kind: input, shape index: {}]   ;;  %s1501_s9 = inlined_call_operand.vmem [shape: f32[80,128], index: 9, kind: output, shape index: {}]  }
   0x1   :  { %1502 = sst [smem:[#allocation7_spill]] %s1494_s2  ;;  %s14_s11 = sshll.u32 %s1492_s0, 4  ;;  %s15_s11 = int_to_ptr.vmem [resolvable:$true] %s14_s11 }
   0x2   :  { %1503 = sst [smem:[#allocation8_spill]] %s1495_s3  ;;  %s1243_s14 = scalar_lea.vmem %s15_s11, 16 }
   0x3   :  { %18 = sst [smem:[#allocation5]] %s1493_s1  ;;  %p1244_p0 = scmp.ne.s32.totalorder %s15_s11, %s1243_s14 }
   0x4   :  { %p1248_p1 = scmp.lt.s32.totalorder %s15_s11, %s15_s11  ;;  %p1249_p2 = scmp.lt.s32.totalorder %s1243_s14, %s1243_s14 }
   0x6   :  { %p1250_p3 = por %p1249_p2, %p1248_p1 }
   0x8   :  { %p1251_p4 = pnand %p1250_p3, %p1244_p0 }
   0xa   :  { %1254 = shalt.err (!%p1251_p4)  }
   0xb   :  { %s1281_s15 = smov [#allocation4]  }
   0xc   :  { %17 = dma.vmem_to_smem %s15_s11, 16, %s1281_s15, [#allocation3] }
   0xd   :  { %1267 = dma.done.wait [#allocation3], 16 }
   0xe   :  { %1268 = vsyncadd [#allocation3], 4294967280 }
   0xf   :  { %20 = sfence }
  0x10   :  { %s1340_s16 = smov 0   ;;  %s1342_s0 = smov 0  }
  0x11   :  { %s1344_s17 = smov 0  }
  0x12 LB: > { %s38_s1 = sadd.s32 1, %s1275_s0  ;;  %p1055_p5 = scmp.ge.s32.totalorder %s1279_s17, 1  ;;  %s1279_s17 = sphi %s1344_s17, %s26_s17   ;;  %s1275_s0 = sphi %s1342_s0, %s1508_s0   ;;  %s1271_s16 = sphi %s1340_s16, %s1507_s16  }
  0x13   : > { %p40_p6 = scmp.ge.s32.totalorder %s38_s1, 5  ;;  %p364_p7 = scmp.lt.s32.totalorder %s1279_s17, 6 }
  0x15   : > { %s1510_s1 = smov (%p40_p6, %s38_s1), 0  ;;  %p365_p8 = pnand %p1055_p5, %p364_p7 }
  0x16   : > { %s1056_s18 = sshll.u32 (!%p365_p8), %s1271_s16, 1  ;;  %s448_s19 = sld [smem:[#allocation4 + %s1271_s16]] (!%p365_p8) }
  0x17   : > { %368 = sbr.rel (%p365_p8) target bundleno = 519 (0x207), region = 48  ;;  %p443_p9 = scmp.lt.s32.totalorder (!%p365_p8), %s1056_s18, 9 }
  0x18   : > { %s458_s20 = sld [smem:[#allocation4 + %s1271_s16]] (!%p365_p8) }
  0x19   : > { %s466_s21 = sld [smem:[#allocation4 + %s1271_s16]] (!%p365_p8) }
  0x1a   : > { %s476_s22 = sld [smem:[#allocation4 + %s1271_s16]] (!%p365_p8) }
  0x1b   : > { %s484_s24 = sld [smem:[#allocation4 + %s1271_s16]] (!%p365_p8) }
  0x1c   : > { %s1512_s18 = smov (!%p443_p9, %s1056_s18), 9  ;;  %s1504_s2 = sld [smem:[#allocation7_spill]] }
  0x1d   : > { %s1057_s23 = sshll.u32 %s1512_s18, 2  ;;  %p449_p10 = scmp.lt.s32.totalorder %s448_s19, 3 }
  0x1e   : > { %p459_p11 = scmp.lt.s32.totalorder %s458_s20, 3  ;;  %s496_s28 = sld [smem:[#allocation4 + %s1271_s16]] }
  0x1f   : > { %s1514_s19 = smov (!%p449_p10, %s448_s19), 3  ;;  %p467_p12 = scmp.lt.s32.totalorder %s466_s21, 3 }
  0x20   : > { %s1516_s20 = smov (!%p459_p11, %s458_s20), 3  ;;  %s1097_s29 = sshll.u32 %s1514_s19, 6 }
  0x21   : > { %s1505_s3 = sld [smem:[#allocation8_spill]]  ;;  %s1518_s21 = smov (!%p467_p12, %s466_s21), 3 }
  0x22   : > { %s1369_s27 = scalar_lea.vmem %s1504_s2, %s1057_s23  ;;  %p477_p13 = scmp.lt.s32.totalorder %s476_s22, 3 }
  0x23   : > { %p486_p0 = scmp.lt.s32.totalorder %s484_s24, 3  ;;  %s1098_s15 = sshll.u32 %s1518_s21, 6 }
  0x24   : > { %p497_p1 = scmp.lt.s32.totalorder %s496_s28, 3  ;;  %s1386_s26 = scalar_lea.vmem %s1497_s5, %s1098_s15 }
  0x25   : > { %s1065_s19 = sshll.u32 %s1512_s18, 3  ;;  %s1520_s22 = smov (!%p477_p13, %s476_s22), 3 }
  0x26   : > { %s1522_s24 = smov (!%p486_p0, %s484_s24), 3  ;;  %s482_s10 = scalar_lea.vmem %s1498_s6, %s1520_s22 }
  0x27   : > { %s1377_s11 = scalar_lea.vmem %s1505_s3, %s1097_s29  ;;  %s1397_s14 = scalar_lea.vmem %s1501_s9, %s1065_s19 }
  0x28   : > { %s1099_s21 = sshll.u32 %s1522_s24, 6  ;;  %s508_s2 = sld [smem:[#allocation5]] }
  0x29   : > { %s1402_s15 = scalar_lea.vmem %s1499_s7, %s1099_s21  ;;  %s1524_s28 = smov (!%p497_p1, %s496_s28), 3 }
  0x2a   : > { %s499_s29 = scalar_lea.vmem %s1500_s8, %s1524_s28 }
  0x2e   : > { %p1066_p2 = scmp.ge.s32.totalorder %s1271_s16, %s508_s2 }
  0x2f   : > { %s1506_s24 = scalar_lea.vmem (!%p1066_p2), %s1496_s4, %s1516_s20 }
  0x30   : > { %512 = sbr.rel (%p1066_p2) target bundleno = 519 (0x207), region = 52 }
  0x35   : > { %v1214_v0 = vld [vmem:[%s1386_s26 + $0x38] sm:$0xff]   ;;  %v1282_v1 = vmov 0.0   ;;  %v1215_v2 = vld [vmem:[%s1386_s26 + $0x30] sm:$0xff]   ;;  %vm1283_vm0 = vmmov 0   ;;  %v1216_v3 = vld [vmem:[%s1386_s26 + $0x28] sm:$0xff]  }
  0x36   : > { %1147 = vmatprep.subr.bf16.mxu1 %v1282_v1  ;;  %1127 = vmatprep.subr.bf16.mxu0 %v1282_v1  ;;  %v1220_v4 = vld [vmem:[%s1377_s11 + $0x38] sm:$0xff]   ;;  %v1222_v5 = vld [vmem:[%s1377_s11 + $0x30] sm:$0xff]   ;;  %v1217_v6 = vld [vmem:[%s1386_s26 + $0x20] sm:$0xff]  }
  0x37   : > { %1148 = vmatpush3.bf16.msra.mxu1 %v1214_v0  ;;  %1163 = vmatprep.mubr.msk.bf16.mxu1 %vm1283_vm0, %v1282_v1  ;;  %v1225_v7 = vld [vmem:[%s1377_s11 + $0x28] sm:$0xff]   ;;  %v1218_v8 = vld [vmem:[%s1386_s26 + $0x18] sm:$0xff]   ;;  %v1226_v9 = vld [vmem:[%s1377_s11 + $0x20] sm:$0xff]  }
  0x38   : > { %1149 = vmatprep.subr.bf16.mxu1 %v1282_v1  ;;  %1143 = vmatprep.mubr.msk.bf16.mxu0 %vm1283_vm0, %v1282_v1  ;;  %v1219_v10 = vld [vmem:[%s1386_s26 + $0x10] sm:$0xff]   ;;  %v1227_v11 = vld [vmem:[%s1377_s11 + $0x18] sm:$0xff]   ;;  %v1221_v12 = vld [vmem:[%s1386_s26 + $0x8] sm:$0xff]  }
  0x39   : > { %1128 = vmatpush3.bf16.msra.mxu0 %v1220_v4  ;;  %v1228_v13 = vld [vmem:[%s1377_s11 + $0x10] sm:$0xff]   ;;  %v1223_v14 = vld [vmem:[%s1386_s26] sm:$0xff]   ;;  %v1229_v15 = vld [vmem:[%s1377_s11 + $0x8] sm:$0xff]  }
  0x3a   : > { %1129 = vmatprep.subr.bf16.mxu0 %v1282_v1  ;;  %v1224_v16 = vld [vmem:[%s1369_s27] sm:$0xff]   ;;  %v1231_v18 = vld [vmem:[%s1402_s15 + $0x38] sm:$0xff]   ;;  %v1232_v19 = vld [vmem:[%s1402_s15 + $0x30] sm:$0xff]  }
  0x3b   : > { %1150 = vmatpush3.bf16.msra.mxu1 %v1215_v2  ;;  %v1230_v17 = vld [vmem:[%s1377_s11] sm:$0xff]   ;;  %v1233_v20 = vld [vmem:[%s1402_s15 + $0x28] sm:$0xff]   ;;  %v1235_v22 = vld [vmem:[%s1402_s15 + $0x18] sm:$0xff]  }
  0x3c   : > { %1151 = vmatprep.subr.bf16.mxu1 %v1282_v1  ;;  %v1234_v21 = vld [vmem:[%s1402_s15 + $0x20] sm:$0xff]   ;;  %v1236_v23 = vld [vmem:[%s1402_s15 + $0x10] sm:$0xff]   ;;  %v1237_v24 = vld [vmem:[%s1402_s15 + $0x8] sm:$0xff]  }
  0x3d   : > { %1130 = vmatpush3.bf16.msra.mxu0 %v1222_v5  ;;  %v1238_v25 = vld [vmem:[%s1402_s15] sm:$0xff]  }
  0x3e   : > { %1131 = vmatprep.subr.bf16.mxu0 %v1282_v1  ;;  %v1077_v26 = vld [vmem:[%s482_s10] ss:$0 sm:$0xff] }
  0x3f   : > { %1152 = vmatpush3.bf16.msra.mxu1 %v1216_v3  ;;  %v1067_v51 = vld [vmem:[%s1506_s24] ss:$0 sm:$0xff] }
  0x40   : > { %1153 = vmatprep.subr.bf16.mxu1 %v1282_v1  ;;  %v1094_v61 = vld [vmem:[%s499_s29] ss:$0 sm:$0xff] }
  0x41   : > { %1132 = vmatpush3.bf16.msra.mxu0 %v1225_v7 }
  0x42   : > { %1133 = vmatprep.subr.bf16.mxu0 %v1282_v1 }
  0x43   : > { %1154 = vmatpush3.bf16.msra.mxu1 %v1217_v6 }
  0x44   : > { %1155 = vmatprep.subr.bf16.mxu1 %v1282_v1 }
  0x45   : > { %1134 = vmatpush3.bf16.msra.mxu0 %v1226_v9 }
  0x46   : > { %1135 = vmatprep.subr.bf16.mxu0 %v1282_v1 }
  0x47   : > { %1156 = vmatpush3.bf16.msra.mxu1 %v1218_v8 }
  0x48   : > { %1157 = vmatprep.subr.bf16.mxu1 %v1282_v1 }
  0x49   : > { %1136 = vmatpush3.bf16.msra.mxu0 %v1227_v11 }
  0x4a   : > { %1137 = vmatprep.subr.bf16.mxu0 %v1282_v1 }
  0x4b   : > { %1158 = vmatpush3.bf16.msra.mxu1 %v1219_v10 }
  0x4c   : > { %1159 = vmatprep.subr.bf16.mxu1 %v1282_v1 }
  0x4d   : > { %1138 = vmatpush3.bf16.msra.mxu0 %v1228_v13 }
  0x4e   : > { %1139 = vmatprep.subr.bf16.mxu0 %v1282_v1 }
  0x4f   : > { %1160 = vmatpush3.bf16.msra.mxu1 %v1221_v12 }
  0x50   : > { %1161 = vmatprep.subr.bf16.mxu1 %v1282_v1 }
  0x51   : > { %1140 = vmatpush3.bf16.msra.mxu0 %v1229_v15 }
  0x52   : > { %1141 = vmatprep.subr.bf16.mxu0 %v1282_v1 }
  0x53   : > { %1162 = vmatpush3.bf16.msra.mxu1 %v1223_v14 }
  0x55   : > { %1142 = vmatpush3.bf16.msra.mxu0 %v1230_v17 }
  0x56   : > { %1164 = vmatmul.mubr.bf16.vlgmr.msra.gmra.mxu1 %v1224_v16  ;;  %1167 = vmatprep.subr.bf16.mxu0 %v1282_v1 }
  0x58   : > { %1144 = vmatmul.mubr.bf16.vlgmr.msra.gmra.mxu0 %v1224_v16 }
  0x59   : > { %1183 = vmatprep.mubr.msk.bf16.mxu0 %vm1283_vm0, %v1282_v1  ;;  %1168 = vmatpush3.bf16.msra.mxu0 %v1231_v18 }
  0x5a   : > { %1169 = vmatprep.subr.bf16.mxu0 %v1282_v1 }
  0x5d   : > { %1170 = vmatpush3.bf16.msra.mxu0 %v1232_v19 }
  0x5e   : > { %1171 = vmatprep.subr.bf16.mxu0 %v1282_v1 }
  0x61   : > { %1172 = vmatpush3.bf16.msra.mxu0 %v1233_v20 }
  0x62   : > { %1173 = vmatprep.subr.bf16.mxu0 %v1282_v1 }
  0x65   : > { %1174 = vmatpush3.bf16.msra.mxu0 %v1234_v21 }
  0x66   : > { %1175 = vmatprep.subr.bf16.mxu0 %v1282_v1 }
  0x69   : > { %1176 = vmatpush3.bf16.msra.mxu0 %v1235_v22 }
  0x6a   : > { %1177 = vmatprep.subr.bf16.mxu0 %v1282_v1 }
  0x6d   : > { %1178 = vmatpush3.bf16.msra.mxu0 %v1236_v23 }
  0x6e   : > { %1179 = vmatprep.subr.bf16.mxu0 %v1282_v1 }
  0x71   : > { %1180 = vmatpush3.bf16.msra.mxu0 %v1237_v24 }
  0x72   : > { %1181 = vmatprep.subr.bf16.mxu0 %v1282_v1 }
  0x75   : > { %1182 = vmatpush3.bf16.msra.mxu0 %v1238_v25 }
 0x116   : > { %v744_v27 = vpop.f32.mrf.mxu1 }
 0x117   : > { %v745_v28 = vadd.f32 %v1077_v26, %v744_v27 }
 0x118   : > { %v1165_v29 = vpop.f32.mrf.mxu1  ;;  %v632_v35 = vpop.f32.mrf.mxu0 }
 0x119   : > { %v751_v30 = vmul.f32 %v745_v28, %v745_v28  ;;  %v633_v53 = vadd.f32 %v1067_v51, %v632_v35 }
 0x11a   : > { %v747_v31 = vpop.f32.mrf.mxu1  ;;  %v1145_v38 = vpop.f32.mrf.mxu0 }
 0x11b   : > { %v753_v32 = vmul.f32 %v751_v30, %v745_v28  ;;  %v748_v33 = vadd.f32 %v1077_v26, %v747_v31 }
 0x11c   : > { %v1166_v34 = vpop.f32.mrf.mxu1  ;;  %v635_v41 = vpop.f32.mrf.mxu0 }
 0x11d   : > { %v755_v36 = vmul.f32 0.044715, %v753_v32  ;;  %v752_v37 = vmul.f32 %v748_v33, %v748_v33  ;;  %v636_v56 = vadd.f32 %v1067_v51, %v635_v41 }
 0x11e   : > { %v1146_v44 = vpop.f32.mrf.mxu0 }
 0x11f   : > { %v757_v39 = vadd.f32 %v755_v36, %v745_v28  ;;  %v754_v40 = vmul.f32 %v752_v37, %v748_v33 }
 0x121   : > { %v759_v42 = vmul.f32 0.7978846, %v757_v39  ;;  %v756_v43 = vmul.f32 0.044715, %v754_v40 }
 0x123   : > { %1239 = vtanh.f32 %v759_v42  ;;  %v758_v45 = vadd.f32 %v756_v43, %v748_v33 }
 0x125   : > { %v760_v46 = vmul.f32 0.7978846, %v758_v45 }
 0x127   : > { %1241 = vtanh.f32 %v760_v46 }
 0x130   : > { %v1240_v47 = vpop.eup %1239 }
 0x131   : > { %v763_v48 = vadd.f32 1.0, %v1240_v47 }
 0x133   : > { %v765_v49 = vmul.f32 0.5, %v763_v48 }
 0x134   : > { %v1242_v50 = vpop.eup %1241 }
 0x135   : > { %v764_v52 = vadd.f32 1.0, %v1242_v50  ;;  %v767_v54 = vmul.f32 %v765_v49, %v745_v28 }
 0x137   : > { %v766_v55 = vmul.f32 0.5, %v764_v52  ;;  %v769_v58 = vmul.f32 %v767_v54, %v633_v53 }
 0x139   : > { %v768_v57 = vmul.f32 %v766_v55, %v748_v33 }
 0x13b   : > { %v770_v59 = vmul.f32 %v768_v57, %v636_v56 }
 0x13d   : > { %v773_v60 = vpack.c.bf16 %v770_v59, %v769_v58 }
 0x13f   : > { %1184 = vmatmul.mubr.bf16.vlgmr.msra.gmra.mxu0 %v773_v60 }
 0x1ff   : > { %v872_v62 = vpop.f32.mrf.mxu0 }
 0x200   : > { %v895_v63 = vadd.f32 %v1094_v61, %v872_v62 }
 0x201   : > { %v1185_v0 = vpop.f32.mrf.mxu0 }
 0x202   : > { %897 = vst [vmem:[%s1397_s14] sm:$0xff] %v895_v63 }
 0x203   : > { %v875_v1 = vpop.f32.mrf.mxu0 }
 0x204   : > { %v896_v2 = vadd.f32 %v1094_v61, %v875_v1 }
 0x205   : > { %v1186_v3 = vpop.f32.mrf.mxu0 }
 0x206   : > { %898 = vst [vmem:[%s1397_s14 + $0x8] sm:$0xff] %v896_v2 }
 0x207 PF: > { %s26_s17 = sadd.s32 1, %s1279_s17   ;;  %s1507_s16 = smov %s1275_s0 }
 0x208   : > { %p23_p3 = scmp.ge.s32.totalorder %s26_s17, 7   ;;  %s1508_s0 = smov %s1510_s1 }
 0x20a   :  { %25 = sbr.rel (!%p23_p3) target bundleno = 18 (0x12), region = 108 }

</bundles_post_ra>
